<compile_context>
chip_gen: v7x
topology: tpu7x:2x2x1
jax: 0.10.0
libtpu: 0.0.40
codegen_flags: <defaults>
</compile_context>

<pallas_src>
import functools

import jax
import jax.numpy as jnp
from jax.experimental import pallas as pl
from jax.experimental.pallas import tpu as pltpu


def _round_up(x: int, m: int) -> int:
    return ((x + m - 1) // m) * m


def _embedding_resident_kernel(ids_ref, w_ref, out_ref):
    """Gather rows from a VMEM-resident embedding table.

    ids_ref: SMEM (padded_tokens,) int32   -- scalar-prefetch operand
    w_ref:   VMEM (vocab, d_model)         -- full table, resident across steps
    out_ref: VMEM (T, d_model)             -- dense output tile for this step
    """
    tile_tokens = out_ref.shape[0]
    base = pl.program_id(0) * tile_tokens

    # Row-by-row VMEM->VMEM copy: exact for any dtype and O(T) regardless of
    # vocab size.  The HBM-facing side stays dense: the whole (T, d_model)
    # tile is written back by the pipeline in one unmasked DMA.
    @pl.loop(0, tile_tokens)
    def _(t):
        row = ids_ref[base + t]
        out_ref[pl.ds(t, 1), :] = w_ref[pl.ds(row, 1), :]


def _embedding_dma_gather_kernel(ids_ref, w_hbm_ref, out_ref, rows_ref, sems,
                                 *, num_inflight):
    """Gather rows straight from HBM with overlapped per-row DMAs.

    ids_ref:   SMEM (padded_tokens,) int32  -- scalar-prefetch operand
    w_hbm_ref: HBM  (vocab, d_model)        -- memory_space=pl.ANY (no auto-DMA)
    out_ref:   VMEM (T, d_model)            -- dense output tile
    rows_ref:  VMEM (T, d_model) scratch    -- DMA landing buffer
    sems:      DMA semaphores (num_inflight,)
    """
    tile_tokens = out_ref.shape[0]
    base = pl.program_id(0) * tile_tokens
    k = num_inflight

    def start_copy(t):
        row = ids_ref[base + t]
        pltpu.make_async_copy(
            w_hbm_ref.at[row],      # (d_model,) row in HBM (data-dependent)
            rows_ref.at[t],         # (d_model,) row of the VMEM scratch
            sems.at[t % k],
        ).start()

    def wait_copy(t):
        # Source index is irrelevant for the wait (only transfer size and
        # semaphore matter); use static row 0, like the paged-attention idiom.
        pltpu.make_async_copy(
            w_hbm_ref.at[0],
            rows_ref.at[t],
            sems.at[t % k],
        ).wait()

    # Keep `num_inflight` row fetches outstanding to hide per-DMA latency.
    @pl.loop(0, tile_tokens)
    def _(t):
        @pl.when(t >= k)
        def _():
            wait_copy(t - k)
        start_copy(t)

    # Drain the last `num_inflight` outstanding copies.
    @pl.loop(tile_tokens - k, tile_tokens)
    def _(t):
        wait_copy(t)

    # One dense (T, d_model) store -> unmasked vst + full-width writeback DMA.
    out_ref[...] = rows_ref[...]


def embedding_lookup(
    weight: jax.Array,
    token_ids: jax.Array,
    *,
    tokens_per_tile: int = 256,
    num_inflight_copies: int = 8,
    vmem_table_budget_bytes: int = 12 * 1024 * 1024,
    force_dma_gather: bool = False,
) -> jax.Array:
    """out[..., :] = weight[token_ids[...], :]  (PyTorch Embedding.forward)."""
    vocab, d_model = weight.shape
    id_shape = token_ids.shape
    flat_ids = token_ids.reshape(-1).astype(jnp.int32)
    num_tokens = flat_ids.shape[0]

    # PyTorch raises on out-of-range ids; Pallas would otherwise issue an
    # out-of-bounds DMA, so clamp into the valid range instead.
    flat_ids = jnp.clip(flat_ids, 0, vocab - 1)

    # Token tile size: multiple of 8 sublanes, big enough to amortize the
    # ~0.35us/step grid overhead, but no bigger than the (padded) token count.
    tile = max(8, min(int(tokens_per_tile), _round_up(num_tokens, 8)))
    tile = _round_up(tile, 8)
    num_tiles = -(-num_tokens // tile)
    padded_tokens = num_tiles * tile
    if padded_tokens != num_tokens:
        # Pad with id 0 (a valid row); padded rows are sliced off below.
        flat_ids = jnp.pad(flat_ids, (0, padded_tokens - num_tokens))
    # NOTE: ids live in SMEM via scalar prefetch (4 B/token); for extremely
    # long token streams (>~100K tokens) chunk the lookup at this wrapper.

    itemsize = jnp.dtype(weight.dtype).itemsize
    table_bytes = vocab * d_model * itemsize
    tile_bytes = tile * d_model * itemsize

    # Resident-table path sizing: table (+ pipeline buffering) plus
    # double-buffered output tiles must fit the conservative budget.
    resident_ok = (2 * table_bytes + 2 * tile_bytes) <= vmem_table_budget_bytes

    cost = pl.CostEstimate(
        flops=0,
        transcendentals=0,
        bytes_accessed=int(table_bytes + 2 * padded_tokens * d_model * itemsize),
    )
    compiler_params = pltpu.CompilerParams(
        # Token tiles are independent -> shard across both TensorCores on v7x
        # (near-zero effect on single-core v5e/v6e).
        dimension_semantics=("parallel",),
    )
    out_shape = jax.ShapeDtypeStruct((padded_tokens, d_model), weight.dtype)

    if resident_ok and not force_dma_gather:
        grid_spec = pltpu.PrefetchScalarGridSpec(
            num_scalar_prefetch=1,
            grid=(num_tiles,),
            in_specs=[
                # Whole table resident in VMEM: constant block index means the
                # pipeline DMAs it from HBM only once (per core).
                pl.BlockSpec((vocab, d_model), lambda i, ids: (0, 0)),
            ],
            out_specs=pl.BlockSpec((tile, d_model), lambda i, ids: (i, 0)),
        )
        out_flat = pl.pallas_call(
            _embedding_resident_kernel,
            out_shape=out_shape,
            grid_spec=grid_spec,
            compiler_params=compiler_params,
            cost_estimate=cost,
        )(flat_ids, weight)
    else:
        num_inflight = max(1, min(int(num_inflight_copies), tile))
        grid_spec = pltpu.PrefetchScalarGridSpec(
            num_scalar_prefetch=1,
            grid=(num_tiles,),
            in_specs=[
                # Large table: leave it in HBM and gather rows with manual,
                # overlapped DMAs inside the kernel.
                pl.BlockSpec(memory_space=pl.ANY),
            ],
            out_specs=pl.BlockSpec((tile, d_model), lambda i, ids: (i, 0)),
            scratch_shapes=[
                pltpu.VMEM((tile, d_model), weight.dtype),
                pltpu.SemaphoreType.DMA((num_inflight,)),
            ],
        )
        out_flat = pl.pallas_call(
            functools.partial(
                _embedding_dma_gather_kernel, num_inflight=num_inflight),
            out_shape=out_shape,
            grid_spec=grid_spec,
            compiler_params=compiler_params,
            cost_estimate=cost,
        )(flat_ids, weight)

    return out_flat[:num_tokens].reshape(*id_shape, d_model)


if __name__ == "__main__":
    # Small, deterministic setup consistent with the module's forward pass.
    num_embeddings = 64   # vocab size
    embedding_dim = 32    # d_model
    batch, seq = 2, 8

    key = jax.random.PRNGKey(0)
    k_w, k_ids = jax.random.split(key)

    # nn.init.trunc_normal_(weight, mean=0, std=1, a=-3, b=3)
    weight = jax.random.truncated_normal(
        k_w, -3.0, 3.0, (num_embeddings, embedding_dim), dtype=jnp.float32
    )
    token_ids = jax.random.randint(
        k_ids, (batch, seq), 0, num_embeddings, dtype=jnp.int32
    )

    ref = weight[token_ids]   # plain-JAX gather == torch weight[token_ids]

    # Path 1: VMEM-resident table (auto-selected for this small vocab).
    out_resident = jax.block_until_ready(embedding_lookup(weight, token_ids))
    assert out_resident.shape == (batch, seq, embedding_dim)
    assert out_resident.dtype == weight.dtype
    assert jnp.array_equal(out_resident, ref), "resident-table path mismatch"

    # Path 2: coalesced HBM row-gather (the large-vocab path), forced here.
    out_dma = jax.block_until_ready(
        embedding_lookup(weight, token_ids, force_dma_gather=True)
    )
    assert out_dma.shape == (batch, seq, embedding_dim)
    assert out_dma.dtype == weight.dtype
    assert jnp.array_equal(out_dma, ref), "DMA-gather path mismatch"

    print("KERNEL_OK")
</pallas_src>

<mosaic_0001>
module attributes {stable_mosaic.version = 11 : i64} {
  func.func @_embedding_resident_kernel(%arg0: i32, %arg1: memref<16xi32, #tpu.memory_space<smem>>, %arg2: memref<64x32xf32, #tpu.memory_space<vmem>>, %arg3: memref<16x32xf32, #tpu.memory_space<vmem>>) attributes {dimension_semantics = [#tpu.dimension_semantics<parallel>], iteration_bounds = array<i64: 1>, scalar_prefetch = 1 : i64, scratch_operands = 0 : i64, tpu.core_type = #tpu.core_type<tc>, window_params = [{pipeline_mode = #tpu.pipeline_mode<synchronous>, transform_indices = @transform_0, window_bounds = array<i64: 64, 32>}, {transform_indices = @transform_1, window_bounds = array<i64: 16, 32>}]} {
    %c16_i32 = arith.constant 16 : i32
    %0 = arith.muli %arg0, %c16_i32 : i32
    %c0_i32 = arith.constant 0 : i32
    %c16_i32_0 = arith.constant 16 : i32
    %1 = arith.addi %c0_i32, %c16_i32_0 : i32
    %c1_i32 = arith.constant 1 : i32
    scf.for %arg4 = %c0_i32 to %1 step %c1_i32  : i32 {
      %c1_i32_2 = arith.constant 1 : i32
      %2 = arith.muli %arg4, %c1_i32_2 : i32
      %c0_i32_3 = arith.constant 0 : i32
      %3 = arith.addi %c0_i32_3, %2 : i32
      %4 = arith.addi %0, %3 : i32
      %5 = arith.index_cast %4 : i32 to index
      %6 = memref.load %arg1[%5] : memref<16xi32, #tpu.memory_space<smem>>
      %7 = arith.index_cast %6 : i32 to index
      %c0 = arith.constant 0 : index
      %8 = vector.load %arg2[%7, %c0] : memref<64x32xf32, #tpu.memory_space<vmem>>, vector<1x32xf32>
      %9 = arith.index_cast %3 : i32 to index
      %c0_4 = arith.constant 0 : index
      %10 = vector.load %arg3[%9, %c0_4] : memref<16x32xf32, #tpu.memory_space<vmem>>, vector<1x32xf32>
      tpu.vector_store %arg3[%9, %c0_4], %8 {strides = array<i32>} : memref<16x32xf32, #tpu.memory_space<vmem>>, vector<1x32xf32>,
    }
    %c16_i32_1 = arith.constant 16 : i32
    return
  }
  func.func @transform_0(%arg0: i32, %arg1: memref<16xi32, #tpu.memory_space<smem>>) -> (i32, i32) {
    %c0_i32 = arith.constant 0 : i32
    %c0_i32_0 = arith.constant 0 : i32
    %c0_i32_1 = arith.constant 0 : i32
    return %c0_i32, %c0_i32_0 : i32, i32
  }
  func.func @transform_1(%arg0: i32, %arg1: memref<16xi32, #tpu.memory_space<smem>>) -> (i32, i32) {
    %c0_i32 = arith.constant 0 : i32
    %c0_i32_0 = arith.constant 0 : i32
    return %arg0, %c0_i32 : i32, i32
  }
}

</mosaic_0001>

<bundles_post_ra>
// kernel: tpu_custom_call.1
= control target key start
LH: loop header
LB: loop body
LE: loop exit
PB: predicated region body
PF: predicated region fallthrough
CT: control target
= control target key end

     0   :  { %s148_s0 = inlined_call_operand.vmem [shape: s32[16], index: 0, kind: input, shape index: {}]   ;;  %s149_s1 = inlined_call_operand.vmem [shape: f32[64,32], index: 1, kind: input, shape index: {}]   ;;  %s150_s2 = inlined_call_operand.hbm [shape: f32[16,32], index: 2, kind: output, shape index: {}]  }
   0x1   :  { %s7_s11 = sshll.u32 %s148_s0, 4  ;;  %s8_s11 = int_to_ptr.vmem [resolvable:$true] %s7_s11 }
   0x2   :  { %s65_s12 = scalar_lea.vmem %s8_s11, 16  ;;  %p70_p1 = scmp.lt.s32.totalorder %s8_s11, %s8_s11 }
   0x3   :  { %p66_p0 = scmp.ne.s32.totalorder %s8_s11, %s65_s12  ;;  %p71_p2 = scmp.lt.s32.totalorder %s65_s12, %s65_s12 }
   0x5   :  { %p72_p3 = por %p71_p2, %p70_p1 }
   0x7   :  { %p73_p4 = pnand %p72_p3, %p66_p0 }
   0x9   :  { %76 = shalt.err (!%p73_p4)  }
   0xa   :  { %s111_s13 = smov [#allocation3]  }
   0xb   :  { %10 = dma.vmem_to_smem %s8_s11, 16, %s111_s13, [#allocation2] }
   0xc   :  { %103 = dma.done.wait [#allocation2], 16 }
   0xd   :  { %104 = vsyncadd [#allocation2], 4294967280 }
   0xe   :  { %12 = sfence }
   0xf   :  { %13 = vsyncpa [#allocation5], 0  ;;  %s107_s14 = smov 0  }
  0x10 LB: > { %s24_s15 = sld [smem:[#allocation3 + %s109_s14]]  ;;  %vm28_vm0 = vcmask 253952   ;;  %s27_s18 = scalar_lea.vmem [#allocation4], %s109_s14  ;;  %s109_s14 = sphi %s107_s14, %s22_s14  }
  0x11   : > { %s22_s14 = sadd.s32 1, %s109_s14  }
  0x12   : > { %p19_p5 = scmp.ge.s32.totalorder %s22_s14, 16  }
  0x13   :  { %s112_s19 = smov (%p19_p5), [#allocation4]  }
  0x14   :  { %21 = sbr.rel (!%p19_p5) target bundleno = 16 (0x10), region = 33  ;;  %s35_s20 = sshll.u32 (%p19_p5), %s112_s19, 4  ;;  %s36_s20 = int_to_ptr.vmem [resolvable:$true] %s35_s20 }
  0x15   :  { %s77_s21 = scalar_lea.vmem (%p19_p5), %s36_s20, 256  ;;  %p82_p7 = scmp.lt.s32.totalorder (%p19_p5), %s36_s20, %s36_s20 }
  0x16   : > { %s25_s17 = scalar_lea.vmem %s149_s1, %s24_s15  ;;  %p78_p6 = scmp.ne.s32.totalorder (%p19_p5), %s36_s20, %s77_s21 }
  0x17   : > { %v26_v0 = vld [vmem:[%s25_s17] sm:$0x1]  ;;  %p83_p8 = scmp.lt.s32.totalorder (%p19_p5), %s77_s21, %s77_s21 }
  0x18   : > { %29 = vst.msk [vmem:[%s27_s18] sm:$0x1] %vm28_vm0, %v26_v0 }
  0x19   :  { %p84_p9 = por (%p19_p5), %p83_p8, %p82_p7 }
  0x1b   :  { %p85_p10 = pnand %p84_p9, %p78_p6 }
  0x1d   :  { %88 = shalt.err (!%p85_p10)
}
  0x1e   :  { %s89_s24 = scalar_lea.hbm %s150_s2, 256 }
  0x1f   :  { %p90_p11 = scmp.ne.s32.totalorder %s150_s2, %s89_s24  ;;  %p93_p12 = scmp.lt.u32.totalorder %s89_s24, %s150_s2 }
  0x21   :  { %p95_p13 = pnand %p93_p12, %p90_p11 }
  0x23   :  { %98 = shalt.err (!%p95_p13)
}
  0x24   :  { %s113_s1 = smov 128   ;;  %s114_s29 = smov 8  }
  0x25   :  { %41 = dma.vmem_to_hbm [thread:$0]  %s36_s20, 256, %s150_s2, [#allocation5], %s113_s1, %s113_s1, %s114_s29  }
  0x26   :  { %105 = dma.done.wait [#allocation5], 256  }
  0x27   :  { %106 = vsyncadd [#allocation5], 4294967040 }
  0x28   :  { %45 = vsyncpa [#allocation5], 1 }

</bundles_post_ra>
